<compile_context>
chip_gen: v6e
topology: v6e:2x2x1
jax: 0.10.0
libtpu: 0.0.40
codegen_flags: <defaults>
</compile_context>

<pallas_src>
import functools

import jax
import jax.numpy as jnp
from jax.experimental import pallas as pl
from jax.experimental.pallas import tpu as pltpu

_LANE = 128
_SUBLANE_BF16 = 16                       # bf16 vregs are (16, 128)
_MXU = 256                               # v6e/v7x MXU is 2x256x256
_RESIDENT_VMEM_BUDGET = 24 * 1024 * 1024
_VMEM_LIMIT_BYTES = 48 * 1024 * 1024     # below v7x's 64 MiB physical VMEM


def _round_up(x, m):
    return ((x + m - 1) // m) * m


def _pick_tile(padded_dim, candidates):
    """Largest candidate that evenly divides padded_dim (falls back to dim)."""
    for c in candidates:
        if c <= padded_dim and padded_dim % c == 0:
            return c
    return padded_dim


def _pad_dims(in_dim, out_dim):
    """Lane-dense contraction / output dims, 256-aligned for the wide MXU."""
    k_pad = _LANE if in_dim <= _LANE else _round_up(in_dim, _MXU)
    n_pad = _LANE if out_dim <= _LANE else _round_up(out_dim, _MXU)
    return k_pad, n_pad


def _choose_m_tiling(m):
    """Pad M to the tile boundary first, then pick tm (never a tiny tile)."""
    if m <= 256:
        m_pad = max(_SUBLANE_BF16, pl.next_power_of_2(m))
        return m_pad, m_pad
    m_pad = _round_up(m, _MXU)
    tm = _pick_tile(m_pad, (1024, 512, 256))
    return m_pad, tm


def _linear_bias_kernel(x_ref, w_ref, b_ref, o_ref):
    # Fast path (whole contraction in one step): no accumulator round trip.
    o_ref[...] = (
        jnp.dot(x_ref[...], w_ref[...], preferred_element_type=jnp.float32)
        + b_ref[...]
    ).astype(o_ref.dtype)


def _linear_bias_acc_kernel(x_ref, w_ref, b_ref, o_ref, acc_ref):
    # K-tiled path with f32 VMEM accumulator.
    k = pl.program_id(2)

    @pl.when(k == 0)
    def _():
        acc_ref[...] = jnp.zeros_like(acc_ref)

    acc_ref[...] += jnp.dot(
        x_ref[...], w_ref[...], preferred_element_type=jnp.float32
    )

    @pl.when(k == pl.num_programs(2) - 1)
    def _():
        o_ref[...] = (acc_ref[...] + b_ref[...]).astype(o_ref.dtype)


def prepare_expert_params(weight, bias, param_dtype=jnp.bfloat16):
    """One-time host-side prep (outside the jitted forward).

    weight: (output_dim, input_dim)  -- PyTorch nn.Linear layout
    bias:   (output_dim,)
    Returns (w_kn, bias_2d): transposed to (K_pad, N_pad), zero-padded to
    MXU-friendly shapes, weight cast to the compute dtype, bias kept f32.
    """
    out_dim, in_dim = weight.shape
    k_pad, n_pad = _pad_dims(in_dim, out_dim)

    w_kn = jnp.zeros((k_pad, n_pad), param_dtype)
    w_kn = w_kn.at[:in_dim, :out_dim].set(weight.T.astype(param_dtype))
    bias_2d = jnp.zeros((1, n_pad), jnp.float32)
    bias_2d = bias_2d.at[0, :out_dim].set(bias.astype(jnp.float32))
    return w_kn, bias_2d


@functools.partial(jax.jit, static_argnames=("out_dim", "out_dtype"))
def basic_expert_forward(x, w_kn, bias_2d, *, out_dim, out_dtype=None):
    """y = x @ W^T + b, matching torch.nn.Linear.

    x:       (..., input_dim)
    w_kn:    (K_pad, N_pad)   from prepare_expert_params
    bias_2d: (1, N_pad) f32   from prepare_expert_params
    """
    k_pad, n_pad = w_kn.shape
    in_dim = x.shape[-1]
    lead = x.shape[:-1]
    m = 1
    for d in lead:
        m *= d
    out_dtype = x.dtype if out_dtype is None else out_dtype
    out_bytes = jnp.dtype(out_dtype).itemsize
    w_bytes = jnp.dtype(w_kn.dtype).itemsize

    m_pad, tm = _choose_m_tiling(m)
    tn = _pick_tile(n_pad, (512, 256, 128))
    grid_m = m_pad // tm

    # Cast + pad in one fused XLA op.  K padding keeps the reduction exact;
    # M padding is bounded by the tile choice and sliced away below.
    x2d = x.reshape(m, in_dim)
    if x2d.dtype != w_kn.dtype:
        x2d = x2d.astype(w_kn.dtype)
    if (m_pad, k_pad) != (m, in_dim):
        x2d = jnp.pad(x2d, ((0, m_pad - m), (0, k_pad - in_dim)))

    def _vmem_resident(tn_):
        # Double-buffered x / weight / bias / out tiles for the K-resident path.
        return (2 * tm * k_pad * w_bytes
                + 2 * k_pad * tn_ * w_bytes
                + 2 * tn_ * 4
                + 2 * tm * tn_ * out_bytes)

    if _vmem_resident(tn) <= _RESIDENT_VMEM_BUDGET:
        # ---- Resident-weight path: no K grid axis, no accumulator. ----
        grid_n = n_pad // tn
        if grid_m * grid_n == 1:
            # Give v7x's second TensorCore something to do on tiny calls.
            if n_pad % (2 * _LANE) == 0:
                tn = n_pad // 2
                grid_n = 2
            elif m_pad % (2 * _SUBLANE_BF16) == 0:
                tm = m_pad // 2
                grid_m = 2

        cost = pl.CostEstimate(
            flops=2 * m_pad * n_pad * k_pad,
            transcendentals=0,
            bytes_accessed=(
                grid_n * m_pad * k_pad * w_bytes   # x re-read per N tile
                + k_pad * n_pad * w_bytes          # weight read once
                + n_pad * 4
                + m_pad * n_pad * out_bytes
            ),
        )
        out2d = pl.pallas_call(
            _linear_bias_kernel,
            out_shape=jax.ShapeDtypeStruct((m_pad, n_pad), out_dtype),
            grid_spec=pltpu.PrefetchScalarGridSpec(
                num_scalar_prefetch=0,
                # N outer / M inner: the weight block index only changes with
                # j, so each weight slab is DMA'd from HBM exactly once.
                grid=(grid_n, grid_m),
                in_specs=[
                    pl.BlockSpec((tm, k_pad), lambda j, i: (i, 0)),
                    pl.BlockSpec((k_pad, tn), lambda j, i: (0, j)),
                    pl.BlockSpec((1, tn), lambda j, i: (0, j)),
                ],
                out_specs=pl.BlockSpec((tm, tn), lambda j, i: (i, j)),
            ),
            compiler_params=pltpu.CompilerParams(
                dimension_semantics=("parallel", "parallel"),
                vmem_limit_bytes=_VMEM_LIMIT_BYTES,
            ),
            cost_estimate=cost,
        )(x2d, w_kn, bias_2d)
    else:
        # ---- K-tiled fallback with f32 accumulator. ----
        tk = _pick_tile(k_pad, (512, 256, 128))
        grid_n = n_pad // tn
        grid_k = k_pad // tk

        cost = pl.CostEstimate(
            flops=2 * m_pad * n_pad * k_pad,
            transcendentals=0,
            bytes_accessed=(
                grid_n * m_pad * k_pad * w_bytes   # x re-read per N tile
                + grid_m * k_pad * n_pad * w_bytes  # w re-read per M tile
                + grid_m * n_pad * 4
                + m_pad * n_pad * out_bytes
            ),
        )
        out2d = pl.pallas_call(
            _linear_bias_acc_kernel,
            out_shape=jax.ShapeDtypeStruct((m_pad, n_pad), out_dtype),
            grid_spec=pltpu.PrefetchScalarGridSpec(
                num_scalar_prefetch=0,
                grid=(grid_m, grid_n, grid_k),
                in_specs=[
                    pl.BlockSpec((tm, tk), lambda i, j, k: (i, k)),
                    pl.BlockSpec((tk, tn), lambda i, j, k: (k, j)),
                    pl.BlockSpec((1, tn), lambda i, j, k: (0, j)),
                ],
                out_specs=pl.BlockSpec((tm, tn), lambda i, j, k: (i, j)),
                scratch_shapes=[pltpu.VMEM((tm, tn), jnp.float32)],
            ),
            compiler_params=pltpu.CompilerParams(
                dimension_semantics=("parallel", "parallel", "arbitrary"),
                vmem_limit_bytes=_VMEM_LIMIT_BYTES,
            ),
            cost_estimate=cost,
        )(x2d, w_kn, bias_2d)

    out2d = out2d[:m, :out_dim]
    return out2d.reshape(*lead, out_dim)


if __name__ == "__main__":
    # Small shapes consistent with BasicExpert(input_dim, output_dim).
    batch, seq, input_dim, output_dim = 2, 8, 32, 64

    key = jax.random.PRNGKey(0)
    k_x, k_w, k_b = jax.random.split(key, 3)

    x = jax.random.normal(k_x, (batch, seq, input_dim), dtype=jnp.float32)
    bound = 1.0 / (input_dim ** 0.5)
    weight = jax.random.uniform(
        k_w, (output_dim, input_dim), dtype=jnp.float32, minval=-bound, maxval=bound
    )
    bias = jax.random.uniform(
        k_b, (output_dim,), dtype=jnp.float32, minval=-bound, maxval=bound
    )

    # One-time param prep (transpose + pad + bf16 cast) outside the jitted fwd.
    w_kn, bias_2d = prepare_expert_params(weight, bias, param_dtype=jnp.bfloat16)

    y = basic_expert_forward(x, w_kn, bias_2d, out_dim=output_dim)
    y = jax.block_until_ready(y)

    # Reference in f32; bf16 MXU inputs -> loose tolerance.
    y_ref = x @ weight.T + bias
    assert y.shape == (batch, seq, output_dim)
    assert y.dtype == x.dtype
    max_err = float(jnp.max(jnp.abs(y - y_ref)))
    assert jnp.allclose(y, y_ref, atol=5e-2, rtol=5e-2), max_err

    print("KERNEL_OK")
</pallas_src>

<mosaic_0001>
module attributes {stable_mosaic.version = 11 : i64} {
  func.func @_linear_bias_kernel(%arg0: i32, %arg1: i32, %arg2: memref<16x128xbf16, #tpu.memory_space<vmem>>, %arg3: memref<128x128xbf16, #tpu.memory_space<vmem>>, %arg4: memref<1x128xf32, #tpu.memory_space<vmem>>, %arg5: memref<16x128xf32, #tpu.memory_space<vmem>>) attributes {dimension_semantics = [#tpu.dimension_semantics<parallel>, #tpu.dimension_semantics<parallel>], iteration_bounds = array<i64: 1, 1>, scalar_prefetch = 0 : i64, scratch_operands = 0 : i64, tpu.core_type = #tpu.core_type<tc>, window_params = [{transform_indices = @transform_0, window_bounds = array<i64: 16, 128>}, {transform_indices = @transform_1, window_bounds = array<i64: 128, 128>}, {transform_indices = @transform_2, window_bounds = array<i64: 1, 128>}, {transform_indices = @transform_3, window_bounds = array<i64: 16, 128>}]} {
    %c0 = arith.constant 0 : index
    %c0_0 = arith.constant 0 : index
    %0 = vector.load %arg2[%c0, %c0_0] : memref<16x128xbf16, #tpu.memory_space<vmem>>, vector<16x128xbf16>
    %c0_1 = arith.constant 0 : index
    %c0_2 = arith.constant 0 : index
    %1 = vector.load %arg3[%c0_1, %c0_2] : memref<128x128xbf16, #tpu.memory_space<vmem>>, vector<128x128xbf16>
    %cst = arith.constant dense<0.000000e+00> : vector<16x128xf32>
    %2 = tpu.matmul %0, %1, %cst {dimension_numbers = #tpu.dot_dimension_numbers<[1], [0], [0], [1], [0, 0, 1, 1], [], []>} : vector<16x128xbf16>, vector<128x128xbf16>, vector<16x128xf32> -> vector<16x128xf32>
    %c0_3 = arith.constant 0 : index
    %c0_4 = arith.constant 0 : index
    %3 = vector.load %arg4[%c0_3, %c0_4] : memref<1x128xf32, #tpu.memory_space<vmem>>, vector<1x128xf32>
    %4 = vector.broadcast %3 : vector<1x128xf32> to vector<16x128xf32>
    %5 = arith.addf %2, %4 : vector<16x128xf32>
    %c0_5 = arith.constant 0 : index
    %c0_6 = arith.constant 0 : index
    %6 = vector.load %arg5[%c0_5, %c0_6] : memref<16x128xf32, #tpu.memory_space<vmem>>, vector<16x128xf32>
    tpu.vector_store %arg5[%c0_5, %c0_6], %5 {strides = array<i32>} : memref<16x128xf32, #tpu.memory_space<vmem>>, vector<16x128xf32>,
    return
  }
  func.func @transform_0(%arg0: i32, %arg1: i32) -> (i32, i32) {
    %c0_i32 = arith.constant 0 : i32
    %c0_i32_0 = arith.constant 0 : i32
    return %arg1, %c0_i32 : i32, i32
  }
  func.func @transform_1(%arg0: i32, %arg1: i32) -> (i32, i32) {
    %c0_i32 = arith.constant 0 : i32
    %c0_i32_0 = arith.constant 0 : i32
    return %c0_i32, %arg0 : i32, i32
  }
  func.func @transform_2(%arg0: i32, %arg1: i32) -> (i32, i32) {
    %c0_i32 = arith.constant 0 : i32
    %c0_i32_0 = arith.constant 0 : i32
    return %c0_i32, %arg0 : i32, i32
  }
  func.func @transform_3(%arg0: i32, %arg1: i32) -> (i32, i32) {
    %c0_i32 = arith.constant 0 : i32
    return %arg1, %arg0 : i32, i32
  }
}

</mosaic_0001>

<bundles_post_ra>
// kernel: basic_expert_forward.1
= control target key start
LH: loop header
LB: loop body
LE: loop exit
PB: predicated region body
PF: predicated region fallthrough
CT: control target
= control target key end

     0   :  { %8 = vsyncpa [#allocation3], 0  ;;  %s231_s12 = smov [#allocation2]   ;;  %s271_s0 = inlined_call_operand.vmem [shape: bf16[16,128], index: 0, kind: input, shape index: {}]   ;;  %s272_s1 = inlined_call_operand.hbm [shape: bf16[128,128], index: 1, kind: input, shape index: {}]   ;;  %s273_s2 = inlined_call_operand.vmem [shape: f32[1,128], index: 2, kind: input, shape index: {}]   ;;  %s274_s3 = inlined_call_operand.vmem [shape: f32[16,128], index: 3, kind: output, shape index: {}]  }
   0x1   :  { %s16_s13 = sshll.u32 %s231_s12, 4  ;;  %s17_s13 = int_to_ptr.vmem [resolvable:$true] %s16_s13 }
   0x2   :  { %s217_s14 = scalar_lea.vmem %s17_s13, 1024  ;;  %p222_p1 = scmp.lt.s32.totalorder %s17_s13, %s17_s13 }
   0x3   :  { %p218_p0 = scmp.ne.s32.totalorder %s17_s13, %s217_s14  ;;  %p223_p2 = scmp.lt.s32.totalorder %s217_s14, %s217_s14 }
   0x5   :  { %p224_p3 = por %p223_p2, %p222_p1 }
   0x7   :  { %p225_p4 = pnand %p224_p3, %p218_p0 }
   0x9   :  { %228 = shalt.err (!%p225_p4)
}
   0xa   :  { %s232_s15 = smov 64   ;;  %s233_s16 = smov 4  }
   0xb   :  { %22 = dma.hbm_to_vmem [thread:$0]  %s272_s1, 1024, %s17_s13, [#allocation3], %s232_s15, %s232_s15, %s233_s16  }
   0xc   :  { %229 = dma.done.wait [#allocation3], 1024  }
   0xd   :  { %230 = vsyncadd [#allocation3], 4294966272  ;;  %v234_v0 = vmov 0.0   ;;  %vm235_vm0 = vmmov 0   ;;  %v200_v1 = vld [vmem:[#allocation2 + $0x38] sm:$0xff]   ;;  %v201_v2 = vld [vmem:[#allocation2 + $0x30] sm:$0xff]  }
   0xe   :  { %175 = vmatprep.subr.bf16.mxu0 %v234_v0  ;;  %191 = vmatprep.mubr.msk.bf16.mxu0 %vm235_vm0, %v234_v0  ;;  %v202_v3 = vld [vmem:[#allocation2 + $0x28] sm:$0xff]   ;;  %v203_v4 = vld [vmem:[#allocation2 + $0x20] sm:$0xff]   ;;  %v204_v5 = vld [vmem:[#allocation2 + $0x18] sm:$0xff]  }
   0xf   :  { %176 = vmatpush3.bf16.msra.mxu0 %v200_v1  ;;  %v205_v6 = vld [vmem:[#allocation2 + $0x10] sm:$0xff]   ;;  %v206_v7 = vld [vmem:[#allocation2 + $0x8] sm:$0xff]   ;;  %v207_v8 = vld [vmem:[#allocation2] sm:$0xff]  }
  0x10   :  { %177 = vmatprep.subr.bf16.mxu0 %v234_v0  ;;  %v208_v9 = vld [vmem:[%s271_s0] sm:$0xff]  }
  0x11   :  { %v156_v10 = vld [vmem:[%s273_s2] ss:$0 sm:$0xff] }
  0x13   :  { %178 = vmatpush3.bf16.msra.mxu0 %v201_v2 }
  0x14   :  { %179 = vmatprep.subr.bf16.mxu0 %v234_v0 }
  0x17   :  { %180 = vmatpush3.bf16.msra.mxu0 %v202_v3 }
  0x18   :  { %181 = vmatprep.subr.bf16.mxu0 %v234_v0 }
  0x1b   :  { %182 = vmatpush3.bf16.msra.mxu0 %v203_v4 }
  0x1c   :  { %183 = vmatprep.subr.bf16.mxu0 %v234_v0 }
  0x1f   :  { %184 = vmatpush3.bf16.msra.mxu0 %v204_v5 }
  0x20   :  { %185 = vmatprep.subr.bf16.mxu0 %v234_v0 }
  0x23   :  { %186 = vmatpush3.bf16.msra.mxu0 %v205_v6 }
  0x24   :  { %187 = vmatprep.subr.bf16.mxu0 %v234_v0 }
  0x27   :  { %188 = vmatpush3.bf16.msra.mxu0 %v206_v7 }
  0x28   :  { %189 = vmatprep.subr.bf16.mxu0 %v234_v0 }
  0x2b   :  { %190 = vmatpush3.bf16.msra.mxu0 %v207_v8 }
  0x2e   :  { %192 = vmatmul.mubr.bf16.vlgmr.msra.gmra.mxu0 %v208_v9 }
  0xee   :  { %v142_v11 = vpop.f32.mrf.mxu0 }
  0xef   :  { %v143_v12 = vadd.f32 %v156_v10, %v142_v11 }
  0xf0   :  { %v193_v13 = vpop.f32.mrf.mxu0 }
  0xf1   :  { %149 = vst [vmem:[%s274_s3] sm:$0xff] %v143_v12 }
  0xf2   :  { %v145_v14 = vpop.f32.mrf.mxu0 }
  0xf3   :  { %v146_v15 = vadd.f32 %v156_v10, %v145_v14 }
  0xf4   :  { %v194_v16 = vpop.f32.mrf.mxu0 }
  0xf5   :  { %150 = vst [vmem:[%s274_s3 + $0x8] sm:$0xff] %v146_v15 }
  0xf6   :  { %155 = vsyncpa [#allocation3], 1 }

</bundles_post_ra>
